<compile_context>
chip_gen: v7x
topology: tpu7x:2x2x1
jax: 0.10.0
libtpu: 0.0.40
codegen_flags: <defaults>
</compile_context>

<pallas_src>
import functools

import jax
import jax.numpy as jnp
import numpy as np
from jax.experimental import pallas as pl
from jax.experimental.pallas import tpu as pltpu


def _vmem_budget_and_tile():
    """(vmem_limit_bytes, point-tile target) chosen per TPU generation."""
    cap = None
    try:
        cap = pltpu.get_tpu_info().vmem_capacity_bytes
    except Exception:
        cap = None
    if cap is not None and cap > (96 << 20):      # v5e / v6e: 128 MiB VMEM
        return 96 << 20, 512
    # v7x (64 MiB physical) or unknown: stay conservative.
    return 48 << 20, 256


def _pick_tile(n, target):
    """Largest multiple of 128 <= target that divides n, else the full extent."""
    if n <= target:
        return n
    t = (target // 128) * 128
    while t >= 128:
        if n % t == 0:
            return t
        t -= 128
    return n


def _maybe_pad_points(points, features):
    """Pad the point axis up to a multiple of 128 (only when N > 128).

    Padded points are placed far from the data, so real points never select
    them as neighbors; padded output columns are sliced off by the caller."""
    N = points.shape[2]
    if N <= 128 or N % 128 == 0:
        return points, features, N
    pad = (-N) % 128
    ppad = jnp.full(points.shape[:2] + (pad,), 1e6, points.dtype)
    fpad = jnp.zeros(features.shape[:2] + (pad,), features.dtype)
    return (jnp.concatenate([points, ppad], axis=2),
            jnp.concatenate([features, fpad], axis=2), N)


# --------------------------------------------------------------------------
# Kernel 1: fused kNN — one MXU dot per (row-tile, col-tile) block over
# norm-augmented operands, plus a streaming top-(k+1) merge kept in VMEM
# scratch.  Output is only the (B, N, k+1) neighbor indices (self at slot 0);
# the (B, N, N) distance matrix never touches HBM.
# --------------------------------------------------------------------------
def _knn_kernel(k1, u_ref, v_ref, out_ref, rvals_ref, ridx_ref):
    jc = pl.program_id(2)
    tnc = v_ref.shape[2]

    @pl.when(jc == 0)
    def _():
        rvals_ref[...] = jnp.full(rvals_ref.shape, -jnp.inf, jnp.float32)
        ridx_ref[...] = jnp.zeros(ridx_ref.shape, jnp.float32)

    dn0 = (((0,), (0,)), ((), ()))   # contract channel axis of both operands
    # u = [2x; -||x||^2; 1], v = [x; 1; -||x||^2]  =>  u_i . v_j = -||x_i - x_j||^2
    d = jax.lax.dot_general(u_ref[0], v_ref[0], dn0,
                            preferred_element_type=jnp.float32)     # (tnr, tnc)
    didx = (jc * tnc + jax.lax.broadcasted_iota(jnp.int32, d.shape, 1)
            ).astype(jnp.float32)                                   # global column ids

    rv = rvals_ref[...]              # running top-k1 values  (tnr, k1)
    ri = ridx_ref[...]               # running top-k1 indices (tnr, k1), f32-coded
    big = jnp.float32(jnp.inf)
    new_v, new_i = [], []
    for _ in range(k1):              # iterative max-extraction over (running ∪ block)
        m = jnp.maximum(jnp.max(rv, axis=1, keepdims=True),
                        jnp.max(d, axis=1, keepdims=True))          # (tnr, 1)
        c1 = jnp.min(jnp.where(rv == m, ri, big), axis=1, keepdims=True)
        c2 = jnp.min(jnp.where(d == m, didx, big), axis=1, keepdims=True)
        chosen = jnp.minimum(c1, c2)            # ties broken toward smaller index
        rv = jnp.where(ri == chosen, -jnp.inf, rv)
        d = jnp.where(didx == chosen, -jnp.inf, d)
        new_v.append(m)
        new_i.append(chosen)
    rvals_ref[...] = jnp.concatenate(new_v, axis=1)
    ridx_ref[...] = jnp.concatenate(new_i, axis=1)

    @pl.when(jc == pl.num_programs(2) - 1)
    def _():
        out_ref[0] = ridx_ref[...].astype(jnp.int32)


def knn_indices(points, k, *, vmem_limit, tile_target, tile=None):
    B, Cp, N = points.shape
    p = points.astype(jnp.float32)
    sq = jnp.sum(p * p, axis=1, keepdims=True)            # (B, 1, N)
    ones = jnp.ones_like(sq)
    u = jnp.concatenate([2.0 * p, -sq, ones], axis=1)     # rows:  (B, Cp+2, N)
    v = jnp.concatenate([p, ones, -sq], axis=1)           # cols:  (B, Cp+2, N)

    tn = tile or _pick_tile(N, tile_target)
    assert N % tn == 0
    nt = N // tn
    k1 = k + 1
    assert k1 <= N

    idx = pl.pallas_call(
        functools.partial(_knn_kernel, k1),
        out_shape=jax.ShapeDtypeStruct((B, N, k1), jnp.int32),
        grid=(B, nt, nt),
        in_specs=[
            pl.BlockSpec((1, Cp + 2, tn), lambda b, i, j: (b, 0, i)),   # row slab
            pl.BlockSpec((1, Cp + 2, tn), lambda b, i, j: (b, 0, j)),   # col slab
        ],
        out_specs=pl.BlockSpec((1, tn, k1), lambda b, i, j: (b, i, 0)),
        scratch_shapes=[pltpu.VMEM((tn, k1), jnp.float32),
                        pltpu.VMEM((tn, k1), jnp.float32)],
        compiler_params=pltpu.CompilerParams(
            dimension_semantics=("parallel", "parallel", "arbitrary"),
            vmem_limit_bytes=vmem_limit,
        ),
    )(u, v)
    # PyTorch semantics: topk(k+1)[1][:, :, 1:] — drop the self match (rank 0).
    return idx[:, :, 1:]


# --------------------------------------------------------------------------
# Kernel 2: fused EdgeConv — per-neighbor one-hot MXU gather (chunked over k),
# split-first-layer MLP (1x1 convs + folded BN + ReLU), running mean over k,
# shortcut 1x1 conv + folded BN, final ReLU.  Channels on sublanes, points on
# lanes; output written lane-dense in the PyTorch (B, C, N) layout.
# --------------------------------------------------------------------------
def _edgeconv_kernel(num_layers, k, idx_ref, feats_ref, *refs):
    out_ref = refs[-1]
    prefs = refs[:-1]

    N = feats_ref.shape[2]
    tn = out_ref.shape[2]

    feats = feats_ref[0]                                   # (F, N) bf16 slab

    # Center tile sliced out of the already-resident slab (no separate DMA).
    start = pl.program_id(1) * tn
    if tn % 128 == 0:
        start = pl.multiple_of(start, 128)
    xc = feats_ref[0, :, pl.ds(start, tn)]                 # (F, tn) bf16

    mm = (((1,), (0,)), ((), ()))                          # standard matmul dims

    # First layer, split form: h1 = relu(W1b^T x_j + (W1a - W1b)^T x_i + b1)
    # -> center term evaluated once per point instead of per (point, neighbor).
    w0b_t = prefs[0][...]                                  # (C1, F) bf16
    w0d_t = prefs[1][...]                                  # (C1, F) bf16
    b0 = prefs[2][...]                                     # (C1, 1) f32
    ctr = jax.lax.dot_general(w0d_t, xc, mm,
                              preferred_element_type=jnp.float32) + b0   # (C1, tn)

    # Remaining-layer weights loaded once (reused across all k chunks).
    layer_ws = [prefs[3 + 2 * (i - 1)][...] for i in range(1, num_layers)]
    layer_bs = [prefs[4 + 2 * (i - 1)][...] for i in range(1, num_layers)]

    ids_all = idx_ref[0, 0]                                # (1, k*tn) int32
    iota_n = jax.lax.broadcasted_iota(jnp.int32, (N, tn), 0)   # hoisted out of loop

    # One-hot gather on the MXU, chunked one neighbor at a time so the peak
    # VMEM is (N, tn) bf16 instead of (N, k*tn).
    # TODO(synk): replace with a native dynamic lane-gather / DMA gather once a
    # stable Pallas TPU primitive exists; on v5e the O(F*k*N*tn) MXU gather
    # crosses over earlier, so a materialized-gather fallback may win there.
    acc = None
    for j in range(k):
        ids_j = ids_all[:, j * tn:(j + 1) * tn]            # (1, tn)
        onehot = (iota_n == ids_j).astype(jnp.bfloat16)    # (N, tn)
        nbr = jax.lax.dot_general(feats, onehot, mm,
                                  preferred_element_type=jnp.bfloat16)   # (F, tn)
        h = jax.lax.dot_general(w0b_t, nbr, mm,
                                preferred_element_type=jnp.float32)
        h = jnp.maximum(h + ctr, 0.0)                      # (C1, tn)
        # Remaining 1x1 conv + folded-BN + ReLU layers (pointwise over (n, k)).
        for w_t, b in zip(layer_ws, layer_bs):
            h = jax.lax.dot_general(w_t, h.astype(jnp.bfloat16), mm,
                                    preferred_element_type=jnp.float32) + b
            h = jnp.maximum(h, 0.0)
        acc = h if acc is None else acc + h                # running sum over k

    fts = acc * (1.0 / k)                                  # mean over neighbors

    # Shortcut 1x1 conv + folded BN, final ReLU; lane-dense (B, C, N) store.
    wsc_t = prefs[-2][...]                                 # (C_last, F) bf16
    bsc = prefs[-1][...]                                   # (C_last, 1) f32
    sc = jax.lax.dot_general(wsc_t, xc, mm,
                             preferred_element_type=jnp.float32) + bsc
    out_ref[0] = jnp.maximum(sc + fts, 0.0).astype(out_ref.dtype)


def edgeconv_forward(points, features, params, k, point_tile=None):
    B, F, _ = features.shape
    vmem_limit, tile_target = _vmem_budget_and_tile()

    # Pad N (only when N > 128 and not lane-aligned) so all blocks stay
    # (8, 128)-clean; padded columns are sliced off the outputs.
    points_p, features_p, N_orig = _maybe_pad_points(points, features)
    N = features_p.shape[2]

    # --- fused kNN: pairwise matmul + streaming top-(k+1), no (B,N,N) in HBM ---
    idx = knn_indices(points_p, k, vmem_limit=vmem_limit,
                      tile_target=tile_target)             # (B, N, k) int32

    # --- tile selection & lane-ordered index tiles for the in-kernel gather ---
    tn = point_tile or _pick_tile(N, tile_target)
    assert N % tn == 0
    nt_count = N // tn
    kt = k * tn
    # For tile t, idx_tiles[b, t, 0, j*tn + i] = neighbor j of point (t*tn + i).
    idx_kt = jnp.transpose(idx, (0, 2, 1)).reshape(B, k, nt_count, tn)
    idx_tiles = jnp.transpose(idx_kt, (0, 2, 1, 3)).reshape(
        B, nt_count, 1, kt).astype(jnp.int32)

    # --- parameter prep: fold BN scale, split first layer, transpose, bf16 ---
    layers = params["layers"]
    wsc, ssc, bsc = params["shortcut"]
    num_layers = len(layers)
    h_last = layers[-1][0].shape[1]

    w0, s0, b0 = layers[0]
    w0f = w0 * s0                                          # (2F, C1), scale folded
    w0a, w0b = w0f[:F], w0f[F:]
    flat = [
        jnp.transpose(w0b).astype(jnp.bfloat16),           # W1b^T        (C1, F)
        jnp.transpose(w0a - w0b).astype(jnp.bfloat16),     # (W1a-W1b)^T  (C1, F)
        jnp.transpose(b0).astype(jnp.float32),             # (C1, 1)
    ]
    for (w, s, b) in layers[1:]:
        flat += [jnp.transpose(w * s).astype(jnp.bfloat16),
                 jnp.transpose(b).astype(jnp.float32)]
    flat += [jnp.transpose(wsc * ssc).astype(jnp.bfloat16),
             jnp.transpose(bsc).astype(jnp.float32)]

    # Features streamed HBM->VMEM in bf16 (halves DMA bytes of the largest
    # streamed operand); MXU still accumulates in f32 inside the kernel.
    feats_bf = features_p.astype(jnp.bfloat16)

    in_specs = [
        pl.BlockSpec((1, 1, 1, kt), lambda b, t: (b, t, 0, 0)),   # index tiles
        pl.BlockSpec((1, F, N), lambda b, t: (b, 0, 0)),          # full gather slab
    ]
    for arr in flat:
        in_specs.append(pl.BlockSpec(arr.shape, lambda b, t: (0, 0)))

    out = pl.pallas_call(
        functools.partial(_edgeconv_kernel, num_layers, k),
        out_shape=jax.ShapeDtypeStruct((B, h_last, N), jnp.float32),
        grid=(B, nt_count),
        in_specs=in_specs,
        out_specs=pl.BlockSpec((1, h_last, tn), lambda b, t: (b, 0, t)),
        compiler_params=pltpu.CompilerParams(
            dimension_semantics=("parallel", "parallel"),
            vmem_limit_bytes=vmem_limit,
        ),
    )(idx_tiles, feats_bf, *flat)

    if N != N_orig:
        out = out[:, :, :N_orig]
        idx = idx[:, :N_orig]
    # Output is already in the PyTorch (B, out_feats[-1], N) layout.
    return out, idx


# --------------------------------------------------------------------------
# Pure-JAX reference (mirrors PyTorch semantics; same knn indices; uses the
# same bf16-rounded folded weights and bf16-rounded features so the check
# isolates accumulation/intermediate-precision differences)
# --------------------------------------------------------------------------
def _fold_round(w, s):
    return (w * s).astype(jnp.bfloat16).astype(jnp.float32)


def reference_forward(features, idx, params):
    f = features.astype(jnp.bfloat16).astype(jnp.float32)
    nbr = jax.vmap(lambda ff, ix: ff[:, ix])(f, idx)       # (B, F, N, k)
    ctr = f[:, :, :, None]
    x = jnp.concatenate([jnp.broadcast_to(ctr, nbr.shape), nbr - ctr], axis=1)
    for (w, s, b) in params["layers"]:
        x = jnp.einsum("bcnk,co->bonk", x, _fold_round(w, s)) + b.reshape(1, -1, 1, 1)
        x = jnp.maximum(x, 0.0)
    fts = jnp.mean(x, axis=-1)                             # (B, H, N)
    wsc, ssc, bsc = params["shortcut"]
    sc = jnp.einsum("bcn,co->bon", f, _fold_round(wsc, ssc)) + bsc.reshape(1, -1, 1)
    return jnp.maximum(sc + fts, 0.0)


# --------------------------------------------------------------------------
# Deterministic parameter construction (inference-mode BN folded to scale/shift)
# --------------------------------------------------------------------------
def make_params(key, in_feat, out_feats, eps=1e-5):
    def fold_bn(kg, kb, km, kv, ch):
        gamma = jax.random.uniform(kg, (ch,), minval=0.8, maxval=1.2)
        beta = 0.1 * jax.random.normal(kb, (ch,))
        rmean = 0.1 * jax.random.normal(km, (ch,))
        rvar = jax.random.uniform(kv, (ch,), minval=0.5, maxval=1.5)
        scale = gamma / jnp.sqrt(rvar + eps)
        shift = beta - rmean * scale
        return (scale.reshape(1, ch).astype(jnp.float32),
                shift.reshape(1, ch).astype(jnp.float32))

    layers = []
    cin = 2 * in_feat
    for cout in out_feats:
        key, kw, kg, kb, km, kv = jax.random.split(key, 6)
        w = (jax.random.normal(kw, (cin, cout)) * (1.0 / np.sqrt(cin))).astype(jnp.float32)
        s, b = fold_bn(kg, kb, km, kv, cout)
        layers.append((w, s, b))
        cin = cout

    h_last = out_feats[-1]
    if in_feat == h_last:
        # identity shortcut (sc = features): equivalent folded form
        wsc = jnp.eye(in_feat, dtype=jnp.float32)
        ssc = jnp.ones((1, h_last), jnp.float32)
        bsc = jnp.zeros((1, h_last), jnp.float32)
    else:
        key, kw, kg, kb, km, kv = jax.random.split(key, 6)
        wsc = (jax.random.normal(kw, (in_feat, h_last)) * (1.0 / np.sqrt(in_feat))).astype(jnp.float32)
        ssc, bsc = fold_bn(kg, kb, km, kv, h_last)
    return {"layers": layers, "shortcut": (wsc, ssc, bsc)}


if __name__ == "__main__":
    B, Cp, N = 2, 3, 16          # points: (B, 3, N)
    in_feat = 4                  # features: (B, 4, N)
    out_feats = (16, 8)          # two EdgeConv 1x1-conv layers
    k = 4                        # neighbors

    key = jax.random.PRNGKey(0)
    kp, kf, kparam = jax.random.split(key, 3)
    points = jax.random.normal(kp, (B, Cp, N), dtype=jnp.float32)
    features = jax.random.normal(kf, (B, in_feat, N), dtype=jnp.float32)
    params = make_params(kparam, in_feat, out_feats)

    out, idx = edgeconv_forward(points, features, params, k)
    out = jax.block_until_ready(out)

    # correctness check against pure-JAX reference (same knn indices; bf16 MXU
    # operands in the kernel -> loose-ish tolerance)
    ref = jax.block_until_ready(reference_forward(features, idx, params))
    np.testing.assert_allclose(np.asarray(out), np.asarray(ref), rtol=2e-2, atol=2e-2)
    assert out.shape == (B, out_feats[-1], N)
    assert idx.shape == (B, N, k)

    print("KERNEL_OK")
</pallas_src>

<mosaic_0001>
module attributes {stable_mosaic.version = 11 : i64} {
  func.func @_knn_kernel(%arg0: i32, %arg1: i32, %arg2: i32, %arg3: memref<1x5x16xf32, #tpu.memory_space<vmem>>, %arg4: memref<1x5x16xf32, #tpu.memory_space<vmem>>, %arg5: memref<1x16x5xi32, #tpu.memory_space<vmem>>, %arg6: memref<16x5xf32, #tpu.memory_space<vmem>>, %arg7: memref<16x5xf32, #tpu.memory_space<vmem>>) attributes {dimension_semantics = [#tpu.dimension_semantics<parallel>, #tpu.dimension_semantics<parallel>, #tpu.dimension_semantics<arbitrary>], iteration_bounds = array<i64: 2, 1, 1>, scalar_prefetch = 0 : i64, scratch_operands = 2 : i64, tpu.core_type = #tpu.core_type<tc>, window_params = [{transform_indices = @transform_0, window_bounds = array<i64: 1, 5, 16>}, {transform_indices = @transform_1, window_bounds = array<i64: 1, 5, 16>}, {transform_indices = @transform_2, window_bounds = array<i64: 1, 16, 5>}]} {
    %c0_i32 = arith.constant 0 : i32
    %0 = arith.cmpi eq, %arg2, %c0_i32 : i32
    %1 = arith.extui %0 : i1 to i32
    %c0_i32_0 = arith.constant 0 : i32
    %2 = arith.cmpi ne, %1, %c0_i32_0 : i32
    scf.if %2 {
      %cst_54 = arith.constant 0xFF800000 : f32
      %144 = vector.broadcast %cst_54 : f32 to vector<16x5xf32>
      %c0_55 = arith.constant 0 : index
      %c0_56 = arith.constant 0 : index
      %145 = vector.load %arg6[%c0_55, %c0_56] : memref<16x5xf32, #tpu.memory_space<vmem>>, vector<16x5xf32>
      tpu.vector_store %arg6[%c0_55, %c0_56], %144 {strides = array<i32>} : memref<16x5xf32, #tpu.memory_space<vmem>>, vector<16x5xf32>,
      %cst_57 = arith.constant 0.000000e+00 : f32
      %146 = vector.broadcast %cst_57 : f32 to vector<16x5xf32>
      %c0_58 = arith.constant 0 : index
      %c0_59 = arith.constant 0 : index
      %147 = vector.load %arg7[%c0_58, %c0_59] : memref<16x5xf32, #tpu.memory_space<vmem>>, vector<16x5xf32>
      tpu.vector_store %arg7[%c0_58, %c0_59], %146 {strides = array<i32>} : memref<16x5xf32, #tpu.memory_space<vmem>>, vector<16x5xf32>,
    } else {
    }
    %c0 = arith.constant 0 : index
    %c0_1 = arith.constant 0 : index
    %c0_2 = arith.constant 0 : index
    %3 = vector.load %arg3[%c0, %c0_1, %c0_2] : memref<1x5x16xf32, #tpu.memory_space<vmem>>, vector<1x5x16xf32>
    %4 = vector.shape_cast %3 : vector<1x5x16xf32> to vector<5x16xf32>
    %c0_3 = arith.constant 0 : index
    %c0_4 = arith.constant 0 : index
    %c0_5 = arith.constant 0 : index
    %5 = vector.load %arg4[%c0_3, %c0_4, %c0_5] : memref<1x5x16xf32, #tpu.memory_space<vmem>>, vector<1x5x16xf32>
    %6 = vector.shape_cast %5 : vector<1x5x16xf32> to vector<5x16xf32>
    %cst = arith.constant dense<0.000000e+00> : vector<16x16xf32>
    %7 = tpu.matmul %4, %6, %cst {dimension_numbers = #tpu.dot_dimension_numbers<[0], [0], [1], [1], [0, 1, 1, 1], [], []>} : vector<5x16xf32>, vector<5x16xf32>, vector<16x16xf32> -> vector<16x16xf32>
    %c16_i32 = arith.constant 16 : i32
    %8 = arith.muli %arg2, %c16_i32 : i32
    %9 = tpu.iota {dimensions = array<i32: 1>} : vector<16x16xi32>
    %10 = vector.broadcast %8 : i32 to vector<16x16xi32>
    %11 = arith.addi %10, %9 : vector<16x16xi32>
    %12 = arith.sitofp %11 : vector<16x16xi32> to vector<16x16xf32>
    %c0_6 = arith.constant 0 : index
    %c0_7 = arith.constant 0 : index
    %13 = vector.load %arg6[%c0_6, %c0_7] : memref<16x5xf32, #tpu.memory_space<vmem>>, vector<16x5xf32>
    %c0_8 = arith.constant 0 : index
    %c0_9 = arith.constant 0 : index
    %14 = vector.load %arg7[%c0_8, %c0_9] : memref<16x5xf32, #tpu.memory_space<vmem>>, vector<16x5xf32>
    %cst_10 = arith.constant dense<0xFF800000> : vector<16xf32>
    %15 = vector.multi_reduction <maximumf>, %13, %cst_10 [1] : vector<16x5xf32> to vector<16xf32>
    %16 = vector.shape_cast %15 : vector<16xf32> to vector<16x1xf32>
    %cst_11 = arith.constant dense<0xFF800000> : vector<16xf32>
    %17 = vector.multi_reduction <maximumf>, %7, %cst_11 [1] : vector<16x16xf32> to vector<16xf32>
    %18 = vector.shape_cast %17 : vector<16xf32> to vector<16x1xf32>
    %19 = arith.maximumf %16, %18 : vector<16x1xf32>
    %20 = vector.broadcast %19 : vector<16x1xf32> to vector<16x5xf32>
    %21 = arith.cmpf oeq, %13, %20 : vector<16x5xf32>
    %cst_12 = arith.constant 0x7F800000 : f32
    %22 = vector.broadcast %cst_12 : f32 to vector<16x5xf32>
    %23 = arith.select %21, %14, %22 : vector<16x5xi1>, vector<16x5xf32>
    %cst_13 = arith.constant dense<0x7F800000> : vector<16xf32>
    %24 = vector.multi_reduction <minimumf>, %23, %cst_13 [1] : vector<16x5xf32> to vector<16xf32>
    %25 = vector.shape_cast %24 : vector<16xf32> to vector<16x1xf32>
    %26 = vector.broadcast %19 : vector<16x1xf32> to vector<16x16xf32>
    %27 = arith.cmpf oeq, %7, %26 : vector<16x16xf32>
    %cst_14 = arith.constant 0x7F800000 : f32
    %28 = vector.broadcast %cst_14 : f32 to vector<16x16xf32>
    %29 = arith.select %27, %12, %28 : vector<16x16xi1>, vector<16x16xf32>
    %cst_15 = arith.constant dense<0x7F800000> : vector<16xf32>
    %30 = vector.multi_reduction <minimumf>, %29, %cst_15 [1] : vector<16x16xf32> to vector<16xf32>
    %31 = vector.shape_cast %30 : vector<16xf32> to vector<16x1xf32>
    %32 = arith.minimumf %25, %31 : vector<16x1xf32>
    %33 = vector.broadcast %32 : vector<16x1xf32> to vector<16x5xf32>
    %34 = arith.cmpf oeq, %14, %33 : vector<16x5xf32>
    %cst_16 = arith.constant 0xFF800000 : f32
    %35 = vector.broadcast %cst_16 : f32 to vector<16x5xf32>
    %36 = arith.select %34, %35, %13 : vector<16x5xi1>, vector<16x5xf32>
    %37 = vector.broadcast %32 : vector<16x1xf32> to vector<16x16xf32>
    %38 = arith.cmpf oeq, %12, %37 : vector<16x16xf32>
    %cst_17 = arith.constant 0xFF800000 : f32
    %39 = vector.broadcast %cst_17 : f32 to vector<16x16xf32>
    %40 = arith.select %38, %39, %7 : vector<16x16xi1>, vector<16x16xf32>
    %cst_18 = arith.constant dense<0xFF800000> : vector<16xf32>
    %41 = vector.multi_reduction <maximumf>, %36, %cst_18 [1] : vector<16x5xf32> to vector<16xf32>
    %42 = vector.shape_cast %41 : vector<16xf32> to vector<16x1xf32>
    %cst_19 = arith.constant dense<0xFF800000> : vector<16xf32>
    %43 = vector.multi_reduction <maximumf>, %40, %cst_19 [1] : vector<16x16xf32> to vector<16xf32>
    %44 = vector.shape_cast %43 : vector<16xf32> to vector<16x1xf32>
    %45 = arith.maximumf %42, %44 : vector<16x1xf32>
    %46 = vector.broadcast %45 : vector<16x1xf32> to vector<16x5xf32>
    %47 = arith.cmpf oeq, %36, %46 : vector<16x5xf32>
    %cst_20 = arith.constant 0x7F800000 : f32
    %48 = vector.broadcast %cst_20 : f32 to vector<16x5xf32>
    %49 = arith.select %47, %14, %48 : vector<16x5xi1>, vector<16x5xf32>
    %cst_21 = arith.constant dense<0x7F800000> : vector<16xf32>
    %50 = vector.multi_reduction <minimumf>, %49, %cst_21 [1] : vector<16x5xf32> to vector<16xf32>
    %51 = vector.shape_cast %50 : vector<16xf32> to vector<16x1xf32>
    %52 = vector.broadcast %45 : vector<16x1xf32> to vector<16x16xf32>
    %53 = arith.cmpf oeq, %40, %52 : vector<16x16xf32>
    %cst_22 = arith.constant 0x7F800000 : f32
    %54 = vector.broadcast %cst_22 : f32 to vector<16x16xf32>
    %55 = arith.select %53, %12, %54 : vector<16x16xi1>, vector<16x16xf32>
    %cst_23 = arith.constant dense<0x7F800000> : vector<16xf32>
    %56 = vector.multi_reduction <minimumf>, %55, %cst_23 [1] : vector<16x16xf32> to vector<16xf32>
    %57 = vector.shape_cast %56 : vector<16xf32> to vector<16x1xf32>
    %58 = arith.minimumf %51, %57 : vector<16x1xf32>
    %59 = vector.broadcast %58 : vector<16x1xf32> to vector<16x5xf32>
    %60 = arith.cmpf oeq, %14, %59 : vector<16x5xf32>
    %cst_24 = arith.constant 0xFF800000 : f32
    %61 = vector.broadcast %cst_24 : f32 to vector<16x5xf32>
    %62 = arith.select %60, %61, %36 : vector<16x5xi1>, vector<16x5xf32>
    %63 = vector.broadcast %58 : vector<16x1xf32> to vector<16x16xf32>
    %64 = arith.cmpf oeq, %12, %63 : vector<16x16xf32>
    %cst_25 = arith.constant 0xFF800000 : f32
    %65 = vector.broadcast %cst_25 : f32 to vector<16x16xf32>
    %66 = arith.select %64, %65, %40 : vector<16x16xi1>, vector<16x16xf32>
    %cst_26 = arith.constant dense<0xFF800000> : vector<16xf32>
    %67 = vector.multi_reduction <maximumf>, %62, %cst_26 [1] : vector<16x5xf32> to vector<16xf32>
    %68 = vector.shape_cast %67 : vector<16xf32> to vector<16x1xf32>
    %cst_27 = arith.constant dense<0xFF800000> : vector<16xf32>
    %69 = vector.multi_reduction <maximumf>, %66, %cst_27 [1] : vector<16x16xf32> to vector<16xf32>
    %70 = vector.shape_cast %69 : vector<16xf32> to vector<16x1xf32>
    %71 = arith.maximumf %68, %70 : vector<16x1xf32>
    %72 = vector.broadcast %71 : vector<16x1xf32> to vector<16x5xf32>
    %73 = arith.cmpf oeq, %62, %72 : vector<16x5xf32>
    %cst_28 = arith.constant 0x7F800000 : f32
    %74 = vector.broadcast %cst_28 : f32 to vector<16x5xf32>
    %75 = arith.select %73, %14, %74 : vector<16x5xi1>, vector<16x5xf32>
    %cst_29 = arith.constant dense<0x7F800000> : vector<16xf32>
    %76 = vector.multi_reduction <minimumf>, %75, %cst_29 [1] : vector<16x5xf32> to vector<16xf32>
    %77 = vector.shape_cast %76 : vector<16xf32> to vector<16x1xf32>
    %78 = vector.broadcast %71 : vector<16x1xf32> to vector<16x16xf32>
    %79 = arith.cmpf oeq, %66, %78 : vector<16x16xf32>
    %cst_30 = arith.constant 0x7F800000 : f32
    %80 = vector.broadcast %cst_30 : f32 to vector<16x16xf32>
    %81 = arith.select %79, %12, %80 : vector<16x16xi1>, vector<16x16xf32>
    %cst_31 = arith.constant dense<0x7F800000> : vector<16xf32>
    %82 = vector.multi_reduction <minimumf>, %81, %cst_31 [1] : vector<16x16xf32> to vector<16xf32>
    %83 = vector.shape_cast %82 : vector<16xf32> to vector<16x1xf32>
    %84 = arith.minimumf %77, %83 : vector<16x1xf32>
    %85 = vector.broadcast %84 : vector<16x1xf32> to vector<16x5xf32>
    %86 = arith.cmpf oeq, %14, %85 : vector<16x5xf32>
    %cst_32 = arith.constant 0xFF800000 : f32
    %87 = vector.broadcast %cst_32 : f32 to vector<16x5xf32>
    %88 = arith.select %86, %87, %62 : vector<16x5xi1>, vector<16x5xf32>
    %89 = vector.broadcast %84 : vector<16x1xf32> to vector<16x16xf32>
    %90 = arith.cmpf oeq, %12, %89 : vector<16x16xf32>
    %cst_33 = arith.constant 0xFF800000 : f32
    %91 = vector.broadcast %cst_33 : f32 to vector<16x16xf32>
    %92 = arith.select %90, %91, %66 : vector<16x16xi1>, vector<16x16xf32>
    %cst_34 = arith.constant dense<0xFF800000> : vector<16xf32>
    %93 = vector.multi_reduction <maximumf>, %88, %cst_34 [1] : vector<16x5xf32> to vector<16xf32>
    %94 = vector.shape_cast %93 : vector<16xf32> to vector<16x1xf32>
    %cst_35 = arith.constant dense<0xFF800000> : vector<16xf32>
    %95 = vector.multi_reduction <maximumf>, %92, %cst_35 [1] : vector<16x16xf32> to vector<16xf32>
    %96 = vector.shape_cast %95 : vector<16xf32> to vector<16x1xf32>
    %97 = arith.maximumf %94, %96 : vector<16x1xf32>
    %98 = vector.broadcast %97 : vector<16x1xf32> to vector<16x5xf32>
    %99 = arith.cmpf oeq, %88, %98 : vector<16x5xf32>
    %cst_36 = arith.constant 0x7F800000 : f32
    %100 = vector.broadcast %cst_36 : f32 to vector<16x5xf32>
    %101 = arith.select %99, %14, %100 : vector<16x5xi1>, vector<16x5xf32>
    %cst_37 = arith.constant dense<0x7F800000> : vector<16xf32>
    %102 = vector.multi_reduction <minimumf>, %101, %cst_37 [1] : vector<16x5xf32> to vector<16xf32>
    %103 = vector.shape_cast %102 : vector<16xf32> to vector<16x1xf32>
    %104 = vector.broadcast %97 : vector<16x1xf32> to vector<16x16xf32>
    %105 = arith.cmpf oeq, %92, %104 : vector<16x16xf32>
    %cst_38 = arith.constant 0x7F800000 : f32
    %106 = vector.broadcast %cst_38 : f32 to vector<16x16xf32>
    %107 = arith.select %105, %12, %106 : vector<16x16xi1>, vector<16x16xf32>
    %cst_39 = arith.constant dense<0x7F800000> : vector<16xf32>
    %108 = vector.multi_reduction <minimumf>, %107, %cst_39 [1] : vector<16x16xf32> to vector<16xf32>
    %109 = vector.shape_cast %108 : vector<16xf32> to vector<16x1xf32>
    %110 = arith.minimumf %103, %109 : vector<16x1xf32>
    %111 = vector.broadcast %110 : vector<16x1xf32> to vector<16x5xf32>
    %112 = arith.cmpf oeq, %14, %111 : vector<16x5xf32>
    %cst_40 = arith.constant 0xFF800000 : f32
    %113 = vector.broadcast %cst_40 : f32 to vector<16x5xf32>
    %114 = arith.select %112, %113, %88 : vector<16x5xi1>, vector<16x5xf32>
    %115 = vector.broadcast %110 : vector<16x1xf32> to vector<16x16xf32>
    %116 = arith.cmpf oeq, %12, %115 : vector<16x16xf32>
    %cst_41 = arith.constant 0xFF800000 : f32
    %117 = vector.broadcast %cst_41 : f32 to vector<16x16xf32>
    %118 = arith.select %116, %117, %92 : vector<16x16xi1>, vector<16x16xf32>
    %cst_42 = arith.constant dense<0xFF800000> : vector<16xf32>
    %119 = vector.multi_reduction <maximumf>, %114, %cst_42 [1] : vector<16x5xf32> to vector<16xf32>
    %120 = vector.shape_cast %119 : vector<16xf32> to vector<16x1xf32>
    %cst_43 = arith.constant dense<0xFF800000> : vector<16xf32>
    %121 = vector.multi_reduction <maximumf>, %118, %cst_43 [1] : vector<16x16xf32> to vector<16xf32>
    %122 = vector.shape_cast %121 : vector<16xf32> to vector<16x1xf32>
    %123 = arith.maximumf %120, %122 : vector<16x1xf32>
    %124 = vector.broadcast %123 : vector<16x1xf32> to vector<16x5xf32>
    %125 = arith.cmpf oeq, %114, %124 : vector<16x5xf32>
    %cst_44 = arith.constant 0x7F800000 : f32
    %126 = vector.broadcast %cst_44 : f32 to vector<16x5xf32>
    %127 = arith.select %125, %14, %126 : vector<16x5xi1>, vector<16x5xf32>
    %cst_45 = arith.constant dense<0x7F800000> : vector<16xf32>
    %128 = vector.multi_reduction <minimumf>, %127, %cst_45 [1] : vector<16x5xf32> to vector<16xf32>
    %129 = vector.shape_cast %128 : vector<16xf32> to vector<16x1xf32>
    %130 = vector.broadcast %123 : vector<16x1xf32> to vector<16x16xf32>
    %131 = arith.cmpf oeq, %118, %130 : vector<16x16xf32>
    %cst_46 = arith.constant 0x7F800000 : f32
    %132 = vector.broadcast %cst_46 : f32 to vector<16x16xf32>
    %133 = arith.select %131, %12, %132 : vector<16x16xi1>, vector<16x16xf32>
    %cst_47 = arith.constant dense<0x7F800000> : vector<16xf32>
    %134 = vector.multi_reduction <minimumf>, %133, %cst_47 [1] : vector<16x16xf32> to vector<16xf32>
    %135 = vector.shape_cast %134 : vector<16xf32> to vector<16x1xf32>
    %136 = arith.minimumf %129, %135 : vector<16x1xf32>
    %137 = tpu.concatenate %19, %45, %71, %97, %123 in 1 : vector<16x1xf32>, vector<16x1xf32>, vector<16x1xf32>, vector<16x1xf32>, vector<16x1xf32> -> vector<16x5xf32>
    %c0_48 = arith.constant 0 : index
    %c0_49 = arith.constant 0 : index
    %138 = vector.load %arg6[%c0_48, %c0_49] : memref<16x5xf32, #tpu.memory_space<vmem>>, vector<16x5xf32>
    tpu.vector_store %arg6[%c0_48, %c0_49], %137 {strides = array<i32>} : memref<16x5xf32, #tpu.memory_space<vmem>>, vector<16x5xf32>,
    %139 = tpu.concatenate %32, %58, %84, %110, %136 in 1 : vector<16x1xf32>, vector<16x1xf32>, vector<16x1xf32>, vector<16x1xf32>, vector<16x1xf32> -> vector<16x5xf32>
    %c0_50 = arith.constant 0 : index
    %c0_51 = arith.constant 0 : index
    %140 = vector.load %arg7[%c0_50, %c0_51] : memref<16x5xf32, #tpu.memory_space<vmem>>, vector<16x5xf32>
    tpu.vector_store %arg7[%c0_50, %c0_51], %139 {strides = array<i32>} : memref<16x5xf32, #tpu.memory_space<vmem>>, vector<16x5xf32>,
    %c0_i32_52 = arith.constant 0 : i32
    %141 = arith.cmpi eq, %arg2, %c0_i32_52 : i32
    %142 = arith.extui %141 : i1 to i32
    %c0_i32_53 = arith.constant 0 : i32
    %143 = arith.cmpi ne, %142, %c0_i32_53 : i32
    scf.if %143 {
      %c0_54 = arith.constant 0 : index
      %c0_55 = arith.constant 0 : index
      %144 = vector.load %arg7[%c0_54, %c0_55] : memref<16x5xf32, #tpu.memory_space<vmem>>, vector<16x5xf32>
      %145 = arith.fptosi %144 : vector<16x5xf32> to vector<16x5xi32>
      %c0_56 = arith.constant 0 : index
      %c0_57 = arith.constant 0 : index
      %c0_58 = arith.constant 0 : index
      %146 = vector.load %arg5[%c0_56, %c0_57, %c0_58] : memref<1x16x5xi32, #tpu.memory_space<vmem>>, vector<1x16x5xi32>
      %147 = vector.shape_cast %146 : vector<1x16x5xi32> to vector<16x5xi32>
      %148 = vector.shape_cast %145 : vector<16x5xi32> to vector<1x16x5xi32>
      tpu.vector_store %arg5[%c0_56, %c0_57, %c0_58], %148 {strides = array<i32>} : memref<1x16x5xi32, #tpu.memory_space<vmem>>, vector<1x16x5xi32>,
    } else {
    }
    return
  }
  func.func @transform_0(%arg0: i32, %arg1: i32, %arg2: i32) -> (i32, i32, i32) {
    %c0_i32 = arith.constant 0 : i32
    %c0_i32_0 = arith.constant 0 : i32
    return %arg0, %c0_i32, %arg1 : i32, i32, i32
  }
  func.func @transform_1(%arg0: i32, %arg1: i32, %arg2: i32) -> (i32, i32, i32) {
    %c0_i32 = arith.constant 0 : i32
    %c0_i32_0 = arith.constant 0 : i32
    return %arg0, %c0_i32, %arg2 : i32, i32, i32
  }
  func.func @transform_2(%arg0: i32, %arg1: i32, %arg2: i32) -> (i32, i32, i32) {
    %c0_i32 = arith.constant 0 : i32
    %c0_i32_0 = arith.constant 0 : i32
    return %arg0, %arg1, %c0_i32 : i32, i32, i32
  }
}

</mosaic_0001>

<bundles_post_ra>
// kernel: tpu_custom_call.1
= control target key start
LH: loop header
LB: loop body
LE: loop exit
PB: predicated region body
PF: predicated region fallthrough
CT: control target
= control target key end

     0   :  { %s791_s9 = smov 0   ;;  %s793_s10 = smov 0   ;;  %s961_s0 = inlined_call_operand.vmem [shape: f32[2,5,16], index: 0, kind: input, shape index: {}]   ;;  %s962_s1 = inlined_call_operand.vmem [shape: f32[2,5,16], index: 1, kind: input, shape index: {}]   ;;  %s963_s2 = inlined_call_operand.vmem [shape: s32[2,16,5], index: 2, kind: output, shape index: {}]  }
   0x1   :  { %s795_s11 = smov 0  }
   0x2 LB: > { %s31_s12 = sadd.s32 1, %s768_s10  ;;  %p701_p0 = scmp.ge.s32.totalorder %s772_s11, 1  ;;  %s772_s11 = sphi %s795_s11, %s12_s11   ;;  %s768_s10 = sphi %s793_s10, %s965_s10   ;;  %s764_s9 = sphi %s791_s9, %s964_s9  }
   0x3   : > { %p33_p1 = scmp.ge.s32.totalorder %s31_s12, 2  ;;  %p151_p2 = scmp.lt.s32.totalorder %s772_s11, 3 }
   0x5   : > { %s967_s12 = smov (%p33_p1, %s31_s12), 0  ;;  %p152_p3 = pnand %p701_p0, %p151_p2 }
   0x6   : > { %p186_p4 = scmp.lt.s32.totalorder (!%p152_p3), %s764_s9, 1  ;;  %vm260_vm0 = vcmask (!%p152_p3), 1044480   ;;  %vm214_vm1 = vcmask (!%p152_p3), 39936   ;;  %v774_v2 = vmov (!%p152_p3), -inf   ;;  %vm355_vm2 = vcmask (!%p152_p3), 130048  }
   0x7   : > { %155 = sbr.rel (%p152_p3) target bundleno = 1906 (0x772), region = 28  ;;  %216 = vst.msk [vmem:[#allocation2 + $0x8] sm:$0xff] (!%p152_p3), %vm214_vm1, %v774_v2  ;;  %215 = vst.msk [vmem:[#allocation2] sm:$0xff] (!%p152_p3), %vm214_vm1, %v774_v2  ;;  %v775_v13 = vmov (!%p152_p3), 0.0   ;;  %v340_v17 = vlaneseq (!%p152_p3) }
   0x8   : > { %218 = vst.msk [vmem:[#allocation3 + $0x8] sm:$0xff] (!%p152_p3), %vm214_vm1, %v775_v13  ;;  %217 = vst.msk [vmem:[#allocation3] sm:$0xff] (!%p152_p3), %vm214_vm1, %v775_v13 }
   0x9   : > { %v341_v22 = vand.u32 (!%p152_p3), 127, %v340_v17 }
   0xb   : > { %v841_v27 = vcvt.s32.f32 (!%p152_p3), %v341_v22 }
   0xe   : > { %s969_s9 = smov (!%p186_p4, %s764_s9), 1  ;;  %v346_v3 = vld [vmem:[#allocation2 + $0x8] sm:$0xff]  ;;  %v345_v7 = vld [vmem:[#allocation2] sm:$0xff] }
   0xf   : > { %s702_s13 = sshll.u32 %s969_s9, 3  ;;  %v352_v4 = vsel %vm214_vm1, %v346_v3, -inf  ;;  %v349_v8 = vsel %vm214_vm1, %v345_v7, -inf  ;;  %v832_v21 = vld [vmem:[#allocation3 + $0x8] sm:$0xff]  ;;  %v835_v23 = vld [vmem:[#allocation3] sm:$0xff]  ;;  %s711_s20 = sshll.u32 %s969_s9, 4 }
  0x10   : > { %s192_s16 = scalar_lea.vmem %s961_s0, %s702_s13  ;;  %s199_s19 = scalar_lea.vmem %s962_s1, %s702_s13  ;;  %353 = vmax.xlane.f32.xlu1 %v352_v4 }
  0x11   : > { %v219_v0 = vld [vmem:[%s192_s16] sm:$0x1f]  ;;  %s208_s23 = scalar_lea.vmem %s963_s2, %s711_s20 }
  0x12   : > { %221 = vxpose.xlu0.b32.start.end [1/1] (short) (narrow) %v219_v0, 16  ;;  %v220_v1 = vld [vmem:[%s199_s19] sm:$0x1f] }
  0x13   : > { %715 = vmatprep.subr.msk.mxu0 %vm260_vm0, %v220_v1 }
  0x14   : > { %716 = vmatpush3.msk.msra.mxu0 %vm260_vm0, %v220_v1 }
  0x43   : > { %350 = vmax.xlane.f32.xlu0 %v349_v8 }
  0x92   : > { %v237_v5 = vpop.trf.xlu0 }
  0x93   : > { %717 = vmatprep.mubr.msk.f32.mxu0 %vm214_vm1, %v237_v5 }
  0x96   : > { %v238_v6 = vpop.trf.xlu0 }
  0x97   : > { %718 = vmatmul.mubr.msk.f32.vlgmr.msra.gmra.mrb[0].mxu0 %vm214_vm1, %v238_v6 }
  0x9d   : > { %v354_v14 = vpop.xlane.xlu1 %353 }
  0xd0   : > { %v351_v16 = vpop.xlane.xlu0 %350 }
 0x16a   : > { %v719_v9 = vpop.f32.mrb[0].mxu0 }
 0x16b   : > { %v330_v10 = vpop.f32.mrb[1].mxu0  ;;  %v359_v12 = vsel %vm355_vm2, %v719_v9, -inf }
 0x16c   : > { %v356_v11 = vsel %vm355_vm2, %v330_v10, -inf }
 0x16d   : > { %357 = vmax.xlane.f32.xlu1 %v356_v11 }
 0x171   : > { %360 = vmax.xlane.f32.xlu1 %v359_v12 }
 0x1fa   : > { %v358_v15 = vpop.xlane.xlu1 %357 }
 0x1fb   : > { %v828_v18 = vmax.f32 %v351_v16, %v358_v15 }
 0x1fd   : > { %vm364_vm4 = vcmp.eq.f32.partialorder %v345_v7, %v828_v18  ;;  %vm374_vm5 = vcmp.eq.f32.partialorder %v330_v10, %v828_v18 }
 0x1fe   : > { %v361_v19 = vpop.xlane.xlu1 %360  ;;  %v366_v26 = vsel %vm364_vm4, %v835_v23, inf  ;;  %v376_v29 = vsel %vm374_vm5, %v841_v27, inf  ;;  %vm565_vm5 = vcmask 15360  }
 0x1ff   : > { %v830_v20 = vmax.f32 %v354_v14, %v361_v19  ;;  %v368_v28 = vsel %vm214_vm1, %v366_v26, inf  ;;  %v378_v30 = vsel %vm355_vm2, %v376_v29, inf }
 0x201   : > { %vm365_vm3 = vcmp.eq.f32.partialorder %v346_v3, %v830_v20  ;;  %vm375_vm6 = vcmp.eq.f32.partialorder %v719_v9, %v830_v20 }
 0x202   : > { %v367_v24 = vsel %vm365_vm3, %v832_v21, inf  ;;  %v377_v31 = vsel %vm375_vm6, %v841_v27, inf  ;;  %vm562_vm6 = vcmask 7168  }
 0x203   : > { %v371_v25 = vsel %vm214_vm1, %v367_v24, inf  ;;  %v381_v32 = vsel %vm355_vm2, %v377_v31, inf }
 0x204   : > { %372 = vmin.xlane.f32.xlu1 %v371_v25 }
 0x208   : > { %369 = vmin.xlane.f32.xlu1 %v368_v28 }
 0x20c   : > { %379 = vmin.xlane.f32.xlu1 %v378_v30 }
 0x210   : > { %382 = vmin.xlane.f32.xlu1 %v381_v32 }
 0x291   : > { %v373_v33 = vpop.xlane.xlu1 %372 }
 0x295   : > { %v370_v34 = vpop.xlane.xlu1 %369 }
 0x299   : > { %v380_v35 = vpop.xlane.xlu1 %379 }
 0x29a   : > { %v850_v36 = vmin.f32 %v370_v34, %v380_v35 }
 0x29c   : > { %vm386_vm8 = vcmp.eq.f32.partialorder %v835_v23, %v850_v36  ;;  %vm390_vm9 = vcmp.eq.f32.partialorder %v841_v27, %v850_v36 }
 0x29d   : > { %v383_v37 = vpop.xlane.xlu1 %382  ;;  %v388_v41 = vsel %vm386_vm8, -inf, %v345_v7  ;;  %v392_v43 = vsel %vm390_vm9, -inf, %v330_v10 }
 0x29e   : > { %v852_v38 = vmin.f32 %v373_v33, %v383_v37  ;;  %v394_v42 = vsel %vm214_vm1, %v388_v41, -inf  ;;  %v400_v44 = vsel %vm355_vm2, %v392_v43, -inf }
 0x2a0   : > { %vm387_vm7 = vcmp.eq.f32.partialorder %v832_v21, %v852_v38  ;;  %vm391_vm10 = vcmp.eq.f32.partialorder %v841_v27, %v852_v38 }
 0x2a1   : > { %v389_v39 = vsel %vm387_vm7, -inf, %v346_v3  ;;  %v393_v45 = vsel %vm391_vm10, -inf, %v719_v9 }
 0x2a2   : > { %v397_v40 = vsel %vm214_vm1, %v389_v39, -inf  ;;  %v403_v46 = vsel %vm355_vm2, %v393_v45, -inf }
 0x2a3   : > { %398 = vmax.xlane.f32.xlu1 %v397_v40 }
 0x2a7   : > { %395 = vmax.xlane.f32.xlu1 %v394_v42 }
 0x2ab   : > { %401 = vmax.xlane.f32.xlu1 %v400_v44 }
 0x2af   : > { %404 = vmax.xlane.f32.xlu1 %v403_v46 }
 0x330   : > { %v399_v47 = vpop.xlane.xlu1 %398 }
 0x334   : > { %v396_v48 = vpop.xlane.xlu1 %395 }
 0x338   : > { %v402_v49 = vpop.xlane.xlu1 %401 }
 0x339   : > { %v406_v50 = vmax.f32 %v396_v48, %v402_v49 }
 0x33b   : > { %vm408_vm13 = vcmp.eq.f32.partialorder %v388_v41, %v406_v50  ;;  %vm418_vm14 = vcmp.eq.f32.partialorder %v392_v43, %v406_v50  ;;  %v563_v28 = vsel %vm562_vm6, %v828_v18, %v406_v50 }
 0x33c   : > { %v405_v51 = vpop.xlane.xlu1 %404  ;;  %v410_v57 = vsel %vm408_vm13, %v835_v23, inf  ;;  %v420_v59 = vsel %vm418_vm14, %v841_v27, inf }
 0x33d   : > { %v407_v52 = vmax.f32 %v399_v47, %v405_v51  ;;  %v412_v58 = vsel %vm214_vm1, %v410_v57, inf  ;;  %v422_v60 = vsel %vm355_vm2, %v420_v59, inf }
 0x33f   : > { %vm419_vm11 = vcmp.eq.f32.partialorder %v393_v45, %v407_v52  ;;  %vm409_vm12 = vcmp.eq.f32.partialorder %v389_v39, %v407_v52  ;;  %v564_v14 = vsel %vm562_vm6, %v830_v20, %v407_v52 }
 0x340   : > { %v421_v53 = vsel %vm419_vm11, %v841_v27, inf  ;;  %v411_v54 = vsel %vm409_vm12, %v832_v21, inf }
 0x341   : > { %v425_v55 = vsel %vm355_vm2, %v421_v53, inf  ;;  %v415_v56 = vsel %vm214_vm1, %v411_v54, inf }
 0x342   : > { %426 = vmin.xlane.f32.xlu0 %v425_v55  ;;  %416 = vmin.xlane.f32.xlu1 %v415_v56 }
 0x346   : > { %413 = vmin.xlane.f32.xlu1 %v412_v58 }
 0x34a   : > { %423 = vmin.xlane.f32.xlu1 %v422_v60 }
 0x3cf   : > { %v427_v61 = vpop.xlane.xlu0 %426  ;;  %v417_v62 = vpop.xlane.xlu1 %416 }
 0x3d0   : > { %v429_v63 = vmin.f32 %v417_v62, %v427_v61 }
 0x3d2   : > { %vm431_vm15 = vcmp.eq.f32.partialorder %v832_v21, %v429_v63  ;;  %vm435_vm0 = vcmp.eq.f32.partialorder %v841_v27, %v429_v63  ;;  %v577_v18 = vsel %vm562_vm6, %v852_v38, %v429_v63 }
 0x3d3   : > { %v414_v0 = vpop.xlane.xlu1 %413  ;;  %v433_v1 = vsel %vm431_vm15, -inf, %v389_v39  ;;  %v437_v3 = vsel %vm435_vm0, -inf, %v393_v45  ;;  %vm568_vm15 = vcmask 23552  }
 0x3d4   : > { %v441_v2 = vsel %vm214_vm1, %v433_v1, -inf  ;;  %v447_v6 = vsel %vm355_vm2, %v437_v3, -inf }
 0x3d5   : > { %442 = vmax.xlane.f32.xlu0 %v441_v2 }
 0x3d7   : > { %v424_v4 = vpop.xlane.xlu1 %423 }
 0x3d8   : > { %v428_v5 = vmin.f32 %v414_v0, %v424_v4 }
 0x3d9   : > { %448 = vmax.xlane.f32.xlu0 %v447_v6 }
 0x3da   : > { %vm430_vm3 = vcmp.eq.f32.partialorder %v835_v23, %v428_v5  ;;  %vm434_vm4 = vcmp.eq.f32.partialorder %v841_v27, %v428_v5  ;;  %v576_v46 = vsel %vm562_vm6, %v850_v36, %v428_v5 }
 0x3db   : > { %v432_v7 = vsel %vm430_vm3, -inf, %v388_v41  ;;  %v436_v9 = vsel %vm434_vm4, -inf, %v392_v43 }
 0x3dc   : > { %v438_v8 = vsel %vm214_vm1, %v432_v7, -inf  ;;  %v444_v10 = vsel %vm355_vm2, %v436_v9, -inf }
 0x3dd   : > { %439 = vmax.xlane.f32.xlu1 %v438_v8 }
 0x3e1   : > { %445 = vmax.xlane.f32.xlu1 %v444_v10 }
 0x462   : > { %v443_v11 = vpop.xlane.xlu0 %442 }
 0x466   : > { %v449_v12 = vpop.xlane.xlu0 %448 }
 0x467   : > { %v451_v13 = vmax.f32 %v443_v11, %v449_v12 }
 0x469   : > { %v567_v15 = vsel %vm565_vm5, %v564_v14, %v451_v13  ;;  %vm453_vm7 = vcmp.eq.f32.partialorder %v433_v1, %v451_v13  ;;  %vm463_vm8 = vcmp.eq.f32.partialorder %v437_v3, %v451_v13 }
 0x46a   : > { %v440_v16 = vpop.xlane.xlu1 %439  ;;  %v455_v17 = vsel %vm453_vm7, %v832_v21, inf  ;;  %v465_v22 = vsel %vm463_vm8, %v841_v27, inf }
 0x46b   : > { %v459_v19 = vsel %vm214_vm1, %v455_v17, inf  ;;  %v469_v26 = vsel %vm355_vm2, %v465_v22, inf }
 0x46c   : > { %460 = vmin.xlane.f32.xlu0 %v459_v19 }
 0x46e   : > { %v446_v24 = vpop.xlane.xlu1 %445 }
 0x46f   : > { %v450_v25 = vmax.f32 %v440_v16, %v446_v24 }
 0x470   : > { %470 = vmin.xlane.f32.xlu0 %v469_v26 }
 0x471   : > { %v566_v20 = vsel %vm565_vm5, %v563_v28, %v450_v25  ;;  %vm452_vm9 = vcmp.eq.f32.partialorder %v432_v7, %v450_v25  ;;  %vm462_vm10 = vcmp.eq.f32.partialorder %v436_v9, %v450_v25 }
 0x472   : > { %v454_v29 = vsel %vm452_vm9, %v835_v23, inf  ;;  %v464_v31 = vsel %vm462_vm10, %v841_v27, inf  ;;  %vm571_vm10 = vcmask 31744  }
 0x473   : > { %v456_v30 = vsel %vm214_vm1, %v454_v29, inf  ;;  %v466_v32 = vsel %vm355_vm2, %v464_v31, inf }
 0x474   : > { %457 = vmin.xlane.f32.xlu1 %v456_v30 }
 0x478   : > { %467 = vmin.xlane.f32.xlu1 %v466_v32 }
 0x4f9   : > { %v461_v33 = vpop.xlane.xlu0 %460 }
 0x4fd   : > { %v471_v34 = vpop.xlane.xlu0 %470 }
 0x4fe   : > { %v473_v35 = vmin.f32 %v461_v33, %v471_v34 }
 0x500   : > { %v579_v37 = vsel %vm565_vm5, %v577_v18, %v473_v35  ;;  %vm475_vm11 = vcmp.eq.f32.partialorder %v832_v21, %v473_v35  ;;  %vm479_vm12 = vcmp.eq.f32.partialorder %v841_v27, %v473_v35 }
 0x501   : > { %v458_v39 = vpop.xlane.xlu1 %457  ;;  %v477_v40 = vsel %vm475_vm11, -inf, %v433_v1  ;;  %v481_v42 = vsel %vm479_vm12, -inf, %v437_v3 }
 0x502   : > { %v485_v41 = vsel %vm214_vm1, %v477_v40, -inf  ;;  %v491_v45 = vsel %vm355_vm2, %v481_v42, -inf }
 0x503   : > { %486 = vmax.xlane.f32.xlu0 %v485_v41 }
 0x505   : > { %v468_v43 = vpop.xlane.xlu1 %467 }
 0x506   : > { %v472_v44 = vmin.f32 %v458_v39, %v468_v43 }
 0x507   : > { %492 = vmax.xlane.f32.xlu0 %v491_v45 }
 0x508   : > { %v578_v38 = vsel %vm565_vm5, %v576_v46, %v472_v44  ;;  %vm474_vm13 = vcmp.eq.f32.partialorder %v835_v23, %v472_v44  ;;  %vm478_vm14 = vcmp.eq.f32.partialorder %v841_v27, %v472_v44 }
 0x509   : > { %v476_v47 = vsel %vm474_vm13, -inf, %v432_v7  ;;  %v480_v49 = vsel %vm478_vm14, -inf, %v436_v9 }
 0x50a   : > { %v482_v48 = vsel %vm214_vm1, %v476_v47, -inf  ;;  %v488_v50 = vsel %vm355_vm2, %v480_v49, -inf }
 0x50b   : > { %483 = vmax.xlane.f32.xlu1 %v482_v48 }
 0x50f   : > { %489 = vmax.xlane.f32.xlu1 %v488_v50 }
 0x590   : > { %v487_v51 = vpop.xlane.xlu0 %486 }
 0x594   : > { %v493_v52 = vpop.xlane.xlu0 %492 }
 0x595   : > { %v495_v53 = vmax.f32 %v487_v51, %v493_v52 }
 0x597   : > { %v570_v36 = vsel %vm568_vm15, %v567_v15, %v495_v53  ;;  %vm497_vm0 = vcmp.eq.f32.partialorder %v477_v40, %v495_v53  ;;  %vm507_vm3 = vcmp.eq.f32.partialorder %v481_v42, %v495_v53 }
 0x598   : > { %v484_v54 = vpop.xlane.xlu1 %483  ;;  %v499_v55 = vsel %vm497_vm0, %v832_v21, inf  ;;  %v509_v57 = vsel %vm507_vm3, %v841_v27, inf }
 0x599   : > { %v503_v56 = vsel %vm214_vm1, %v499_v55, inf  ;;  %v513_v60 = vsel %vm355_vm2, %v509_v57, inf }
 0x59a   : > { %504 = vmin.xlane.f32.xlu0 %v503_v56 }
 0x59c   : > { %v490_v58 = vpop.xlane.xlu1 %489 }
 0x59d   : > { %v494_v59 = vmax.f32 %v484_v54, %v490_v58 }
 0x59e   : > { %514 = vmin.xlane.f32.xlu0 %v513_v60 }
 0x59f   : > { %v569_v61 = vsel %vm568_vm15, %v566_v20, %v494_v59  ;;  %vm496_vm4 = vcmp.eq.f32.partialorder %v476_v47, %v494_v59  ;;  %vm506_vm5 = vcmp.eq.f32.partialorder %v480_v49, %v494_v59 }
 0x5a0   : > { %v498_v62 = vsel %vm496_vm4, %v835_v23, inf  ;;  %v508_v0 = vsel %vm506_vm5, %v841_v27, inf }
 0x5a1   : > { %v500_v63 = vsel %vm214_vm1, %v498_v62, inf  ;;  %v510_v1 = vsel %vm355_vm2, %v508_v0, inf }
 0x5a2   : > { %501 = vmin.xlane.f32.xlu1 %v500_v63 }
 0x5a6   : > { %511 = vmin.xlane.f32.xlu1 %v510_v1 }
 0x627   : > { %v505_v2 = vpop.xlane.xlu0 %504 }
 0x62b   : > { %v515_v3 = vpop.xlane.xlu0 %514 }
 0x62c   : > { %v517_v4 = vmin.f32 %v505_v2, %v515_v3 }
 0x62e   : > { %v581_v5 = vsel %vm568_vm15, %v579_v37, %v517_v4  ;;  %vm519_vm6 = vcmp.eq.f32.partialorder %v832_v21, %v517_v4  ;;  %vm523_vm7 = vcmp.eq.f32.partialorder %v841_v27, %v517_v4 }
 0x62f   : > { %v502_v6 = vpop.xlane.xlu1 %501  ;;  %v521_v7 = vsel %vm519_vm6, -inf, %v477_v40  ;;  %v525_v9 = vsel %vm523_vm7, -inf, %v481_v42 }
 0x630   : > { %v529_v8 = vsel %vm214_vm1, %v521_v7, -inf  ;;  %v535_v12 = vsel %vm355_vm2, %v525_v9, -inf }
 0x631   : > { %530 = vmax.xlane.f32.xlu0 %v529_v8 }
 0x633   : > { %v512_v10 = vpop.xlane.xlu1 %511 }
 0x634   : > { %v516_v11 = vmin.f32 %v502_v6, %v512_v10 }
 0x635   : > { %536 = vmax.xlane.f32.xlu0 %v535_v12 }
 0x636   : > { %v580_v13 = vsel %vm568_vm15, %v578_v38, %v516_v11  ;;  %vm518_vm8 = vcmp.eq.f32.partialorder %v835_v23, %v516_v11  ;;  %vm522_vm9 = vcmp.eq.f32.partialorder %v841_v27, %v516_v11 }
 0x637   : > { %v520_v14 = vsel %vm518_vm8, -inf, %v476_v47  ;;  %v524_v16 = vsel %vm522_vm9, -inf, %v480_v49 }
 0x638   : > { %v526_v15 = vsel %vm214_vm1, %v520_v14, -inf  ;;  %v532_v17 = vsel %vm355_vm2, %v524_v16, -inf }
 0x639   : > { %527 = vmax.xlane.f32.xlu1 %v526_v15 }
 0x63d   : > { %533 = vmax.xlane.f32.xlu1 %v532_v17 }
 0x6be   : > { %v531_v19 = vpop.xlane.xlu0 %530 }
 0x6c2   : > { %v537_v22 = vpop.xlane.xlu0 %536 }
 0x6c3   : > { %v539_v24 = vmax.f32 %v531_v19, %v537_v22 }
 0x6c5   : > { %v573_v25 = vsel %vm571_vm10, %v570_v36, %v539_v24  ;;  %vm541_vm11 = vcmp.eq.f32.partialorder %v521_v7, %v539_v24  ;;  %vm551_vm12 = vcmp.eq.f32.partialorder %v525_v9, %v539_v24 }
 0x6c6   : > { %575 = vst.msk [vmem:[#allocation2 + $0x8] sm:$0xff] %vm214_vm1, %v573_v25  ;;  %v528_v26 = vpop.xlane.xlu1 %527  ;;  %v543_v28 = vsel %vm541_vm11, %v832_v21, inf  ;;  %v553_v29 = vsel %vm551_vm12, %v841_v27, inf }
 0x6c7   : > { %v547_v20 = vsel %vm214_vm1, %v543_v28, inf  ;;  %v557_v32 = vsel %vm355_vm2, %v553_v29, inf }
 0x6c8   : > { %548 = vmin.xlane.f32.xlu0 %v547_v20 }
 0x6ca   : > { %v534_v30 = vpop.xlane.xlu1 %533 }
 0x6cb   : > { %v538_v31 = vmax.f32 %v528_v26, %v534_v30 }
 0x6cc   : > { %558 = vmin.xlane.f32.xlu0 %v557_v32 }
 0x6cd   : > { %v572_v33 = vsel %vm571_vm10, %v569_v61, %v538_v31  ;;  %vm540_vm13 = vcmp.eq.f32.partialorder %v520_v14, %v538_v31  ;;  %vm550_vm14 = vcmp.eq.f32.partialorder %v524_v16, %v538_v31 }
 0x6ce   : > { %574 = vst.msk [vmem:[#allocation2] sm:$0xff] %vm214_vm1, %v572_v33  ;;  %v542_v34 = vsel %vm540_vm13, %v835_v23, inf  ;;  %v552_v35 = vsel %vm550_vm14, %v841_v27, inf }
 0x6cf   : > { %v544_v21 = vsel %vm214_vm1, %v542_v34, inf  ;;  %v554_v18 = vsel %vm355_vm2, %v552_v35, inf }
 0x6d0   : > { %545 = vmin.xlane.f32.xlu1 %v544_v21 }
 0x6d4   : > { %555 = vmin.xlane.f32.xlu1 %v554_v18 }
 0x755   : > { %v549_v37 = vpop.xlane.xlu0 %548 }
 0x759   : > { %v559_v39 = vpop.xlane.xlu0 %558 }
 0x75a   : > { %v561_v40 = vmin.f32 %v549_v37, %v559_v39 }
 0x75c   : > { %v583_v41 = vsel %vm571_vm10, %v581_v5, %v561_v40 }
 0x75d   : > { %585 = vst.msk [vmem:[#allocation3 + $0x8] sm:$0xff] %vm214_vm1, %v583_v41  ;;  %v546_v42 = vpop.xlane.xlu1 %545 }
 0x761   : > { %v556_v43 = vpop.xlane.xlu1 %555 }
 0x762   : > { %v560_v44 = vmin.f32 %v546_v42, %v556_v43 }
 0x764   : > { %v590_v23 = vld [vmem:[#allocation3 + $0x8] sm:$0xff]  ;;  %v582_v45 = vsel %vm571_vm10, %v580_v13, %v560_v44 }
 0x765   : > { %v722_v46 = vtrunc.f32 %v590_v23  ;;  %584 = vst.msk [vmem:[#allocation3] sm:$0xff] %vm214_vm1, %v582_v45 }
 0x767   : > { %v723_v27 = vcvt.f32.s32 %v722_v46 }
 0x769   : > { %594 = vst.msk [vmem:[%s208_s23 + $0x8] sm:$0xff] %vm214_vm1, %v723_v27 }
 0x76c   : > { %v589_v38 = vld [vmem:[#allocation3] sm:$0xff] }
 0x76d   : > { %v720_v47 = vtrunc.f32 %v589_v38 }
 0x76f   : > { %v721_v48 = vcvt.f32.s32 %v720_v47 }
 0x771   : > { %593 = vst.msk [vmem:[%s208_s23] sm:$0xff] %vm214_vm1, %v721_v48 }
 0x772 PF: > { %s12_s11 = sadd.s32 1, %s772_s11   ;;  %s964_s9 = smov %s768_s10 }
 0x773   : > { %p9_p5 = scmp.ge.s32.totalorder %s12_s11, 4   ;;  %s965_s10 = smov %s967_s12 }
 0x775   :  { %11 = sbr.rel (!%p9_p5) target bundleno = 2 (0x2), region = 69 }

</bundles_post_ra>
